<compile_context>
chip_gen: v7x
topology: tpu7x:2x2x1
jax: 0.10.0
libtpu: 0.0.40
codegen_flags: <defaults>
</compile_context>

<pallas_src>
import math
import functools

import jax
import jax.numpy as jnp
from jax.experimental import pallas as pl
from jax.experimental.pallas import tpu as pltpu


def _transformer_kernel(z_ref, m_ref, a_ref, out_ref, *,
                        d, h_type, n_plus_1, num_layers):
    # z_ref block: (bb, d_model, N); m_ref / a_ref: (L, d_model, d_model)
    bb, d_model, N = z_ref.shape
    idx = n_plus_1 - 1

    # Small masks, built once at trace time, shared across batch elements and layers.
    row_mask = None
    diag_mask = None
    if n_plus_1 > 0:
        row_iota = jax.lax.broadcasted_iota(jnp.int32, (N, 1), 0)
        row_mask = row_iota == idx                                    # (N, 1)
        if h_type != 'softmax':
            col_iota = jax.lax.broadcasted_iota(jnp.int32, (1, N), 1)
            diag_mask = jnp.logical_and(row_mask, col_iota == idx)    # (N, N) bool

    def apply_layer(z, layer_idx):
        M = m_ref[layer_idx]          # (d_model, d_model) = [[B^T C, 0], [0, 0]]
        A = a_ref[layer_idx]          # (d_model, d_model) = [[A,     0], [0, r]]

        w = jnp.dot(M, z, preferred_element_type=jnp.float32)        # (d_model, N)
        # scores[n, m] = sum_i z[i, n] * w[i, m]  ==  (X^T B^T C X)[n, m]
        # Contraction expressed directly (no explicit transpose of the operand).
        scores = jax.lax.dot_general(
            z, w,
            dimension_numbers=(((0,), (0,)), ((), ())),
            preferred_element_type=jnp.float32)                       # (N, N)

        if h_type == 'linear':
            att = scores
        elif h_type == 'relu':
            att = jnp.maximum(scores, 0.0)
        elif h_type == 'exp':
            att = jnp.exp(scores / d) if d != 0 else jnp.exp(scores)
        elif h_type == 'softmax':
            mx = jnp.max(scores, axis=-1, keepdims=True)
            e = jnp.exp(scores - mx)
            att = e * pl.reciprocal(jnp.sum(e, axis=-1, keepdims=True),
                                    approx=True)
        else:
            raise ValueError(f'Unknown h_type: {h_type}')

        if n_plus_1 > 0:
            if h_type == 'softmax':
                # Zero the whole row n_plus_1 - 1 (post-normalization, matching torch).
                att = jnp.where(row_mask, 0.0, att)
            else:
                # Zero the single diagonal element [n_plus_1 - 1, n_plus_1 - 1].
                att = jnp.where(diag_mask, 0.0, att)

        # Value path: one matmul for X and Y together, then the fused residual update.
        z_att = jnp.dot(z, att, preferred_element_type=jnp.float32)    # (d_model, N)
        delta = jnp.dot(A, z_att, preferred_element_type=jnp.float32)  # (d_model, N)
        return z + delta

    # num_layers is small and static -> Python loop (fully unrolled, static weight
    # indices).  TODO(synk): for very deep stacks switch to lax.fori_loop with dynamic
    # m_ref[l] / a_ref[l] indexing to bound code size.
    for b in range(bb):
        z = z_ref[b].astype(jnp.float32)
        for l in range(num_layers):
            z = apply_layer(z, l)
        out_ref[b] = z.astype(out_ref.dtype)


def _pick_batch_block(batch, max_block=8):
    for bb in range(min(batch, max_block), 0, -1):
        if batch % bb == 0:
            return bb
    return 1


def transformer_forward(Z, M_ext, A_ext, *, d, h_type, n_plus_1, batch_block=None):
    """Run the whole layer stack in a single pallas_call.

    Z:      (B, d_model, N)         with d_model = d + 1
    M_ext:  (L, d_model, d_model)   fused, zero-padded  B_l^T @ C_l
    A_ext:  (L, d_model, d_model)   fused               [[A_l, 0], [0, r_l]]
    """
    Bsz, d_model, N = Z.shape
    L = M_ext.shape[0]
    if d_model != d + 1:
        raise ValueError(f'd_model={d_model} must equal d+1={d + 1}')
    if n_plus_1 > N:
        raise ValueError(f'n_plus_1={n_plus_1} exceeds number of tokens N={N}')

    bb = batch_block if batch_block is not None else _pick_batch_block(Bsz)
    if Bsz % bb != 0:
        raise ValueError(f'batch {Bsz} not divisible by batch_block {bb}')

    # Raise the scoped-VMEM limit only when the (untiled) N^2 attention working set
    # exceeds the default budget.  Capped conservatively for v7x (64 MiB VMEM/TC).
    nn_bytes = 4 * N * N
    io_bytes = 4 * bb * d_model * N
    vmem_limit = None
    if 4 * nn_bytes + 4 * io_bytes > (24 << 20):
        vmem_limit = min(6 * nn_bytes + 4 * io_bytes + (8 << 20), 64 << 20)

    kernel = functools.partial(_transformer_kernel, d=d, h_type=h_type,
                               n_plus_1=n_plus_1, num_layers=L)
    return pl.pallas_call(
        kernel,
        out_shape=jax.ShapeDtypeStruct((Bsz, d_model, N), Z.dtype),
        grid=(Bsz // bb,),
        in_specs=[
            pl.BlockSpec((bb, d_model, N), lambda i: (i, 0, 0)),        # Z
            pl.BlockSpec((L, d_model, d_model), lambda i: (0, 0, 0)),   # M_ext (all layers)
            pl.BlockSpec((L, d_model, d_model), lambda i: (0, 0, 0)),   # A_ext (all layers)
        ],
        out_specs=pl.BlockSpec((bb, d_model, N), lambda i: (i, 0, 0)),
        compiler_params=pltpu.CompilerParams(
            dimension_semantics=("parallel",),
            vmem_limit_bytes=vmem_limit,
        ),
    )(Z, M_ext, A_ext)


class TransformerModelPallas:
    def __init__(self, num_layers, d, h_type, n_plus_1, key):
        self.d = d
        self.h_type = h_type
        self.n_plus_1 = n_plus_1
        d_model = d + 1

        self.params = []          # original (A, r, B, C) kept for the reference check
        m_ext_list, a_ext_list = [], []
        for _ in range(num_layers):
            key, k_a, k_r, k_b, k_c = jax.random.split(key, 5)
            A = jax.random.normal(k_a, (d, d), jnp.float32) / math.sqrt(d)
            r = jax.random.normal(k_r, (1,), jnp.float32)
            B = jax.random.normal(k_b, (d, d), jnp.float32) / math.sqrt(d)
            C = jax.random.normal(k_c, (d, d), jnp.float32) / math.sqrt(d)
            self.params.append((A, r, B, C))

            M_ext = jnp.zeros((d_model, d_model), jnp.float32).at[:d, :d].set(B.T @ C)
            A_ext = (jnp.zeros((d_model, d_model), jnp.float32)
                     .at[:d, :d].set(A)
                     .at[d, d].set(r[0]))
            m_ext_list.append(M_ext)
            a_ext_list.append(A_ext)

        self.M_ext = jnp.stack(m_ext_list)   # (L, d_model, d_model)
        self.A_ext = jnp.stack(a_ext_list)   # (L, d_model, d_model)

    def forward(self, Z0):
        return transformer_forward(Z0, self.M_ext, self.A_ext,
                                    d=self.d, h_type=self.h_type,
                                    n_plus_1=self.n_plus_1)

    def predict(self, Z_final):
        # glue: extraction only
        return Z_final[:, self.d, self.n_plus_1 - 1]


# --- pure-JAX reference (mirrors the PyTorch module exactly) ---
def _reference_layer(Z, A, B_l, C_l, r, *, d, h_type, n_plus_1):
    X = Z[:, :d, :]
    Y = Z[:, d:, :]
    U = jnp.einsum('ij,bjn->bin', B_l, X)
    W = jnp.einsum('ij,bjn->bin', C_l, X)
    scores = jnp.einsum('bin,bim->bnm', U, W)
    if h_type == 'linear':
        att = scores
    elif h_type == 'relu':
        att = jnp.maximum(scores, 0.0)
    elif h_type == 'exp':
        att = jnp.exp(scores / d) if d != 0 else jnp.exp(scores)
    elif h_type == 'softmax':
        att = jax.nn.softmax(scores, axis=-1)
    if h_type in ('linear', 'relu', 'exp'):
        if n_plus_1 > 0:
            att = att.at[:, n_plus_1 - 1, n_plus_1 - 1].set(0.0)
    else:
        if n_plus_1 > 0:
            att = att.at[:, n_plus_1 - 1, :].set(0.0)
    delta_X = jnp.einsum('ij,bjn->bin', A, jnp.einsum('bdn,bnm->bdm', X, att))
    delta_Y = r[0] * jnp.einsum('bdn,bnm->bdm', Y, att)
    return jnp.concatenate([X + delta_X, Y + delta_Y], axis=1)


if __name__ == "__main__":
    num_layers = 2
    d = 4            # d_covariates
    N = 8            # tokens
    n_plus_1 = N
    Bsz = 2
    d_model = d + 1

    key = jax.random.PRNGKey(0)
    key, k_z = jax.random.split(key)
    Z0 = jax.random.normal(k_z, (Bsz, d_model, N), jnp.float32)

    for h_type in ('softmax', 'relu'):
        key, k_params = jax.random.split(key)
        model = TransformerModelPallas(num_layers, d, h_type, n_plus_1, k_params)

        Z_final = jax.block_until_ready(model.forward(Z0))

        # reference check (tolerance accounts for pl.reciprocal(approx=True) and the
        # mathematically-equivalent B^T C / block-diagonal re-association)
        Z_ref = Z0
        for (A, r, B, C) in model.params:
            Z_ref = _reference_layer(Z_ref, A, B, C, r,
                                     d=d, h_type=h_type, n_plus_1=n_plus_1)
        assert Z_final.shape == (Bsz, d_model, N)
        assert jnp.allclose(Z_final, Z_ref, atol=2e-2, rtol=2e-2), \
            f"mismatch vs reference for h_type={h_type}"

        _ = jax.block_until_ready(model.predict(Z_final))

    print("KERNEL_OK")
</pallas_src>

<mosaic_0001>
module attributes {stable_mosaic.version = 11 : i64} {
  func.func @_transformer_kernel(%arg0: i32, %arg1: memref<2x5x8xf32, #tpu.memory_space<vmem>>, %arg2: memref<2x5x5xf32, #tpu.memory_space<vmem>>, %arg3: memref<2x5x5xf32, #tpu.memory_space<vmem>>, %arg4: memref<2x5x8xf32, #tpu.memory_space<vmem>>) attributes {dimension_semantics = [#tpu.dimension_semantics<parallel>], iteration_bounds = array<i64: 1>, scalar_prefetch = 0 : i64, scratch_operands = 0 : i64, tpu.core_type = #tpu.core_type<tc>, window_params = [{transform_indices = @transform_0, window_bounds = array<i64: 2, 5, 8>}, {pipeline_mode = #tpu.pipeline_mode<synchronous>, transform_indices = @transform_1, window_bounds = array<i64: 2, 5, 5>}, {pipeline_mode = #tpu.pipeline_mode<synchronous>, transform_indices = @transform_2, window_bounds = array<i64: 2, 5, 5>}, {transform_indices = @transform_3, window_bounds = array<i64: 2, 5, 8>}]} {
    %0 = tpu.iota {dimensions = array<i32: 0>} : vector<8x1xi32>
    %c7_i32 = arith.constant 7 : i32
    %1 = vector.broadcast %c7_i32 : i32 to vector<8x1xi32>
    %2 = arith.cmpi eq, %0, %1 : vector<8x1xi32>
    %c0 = arith.constant 0 : index
    %c0_0 = arith.constant 0 : index
    %c0_1 = arith.constant 0 : index
    %3 = vector.load %arg1[%c0, %c0_0, %c0_1] : memref<2x5x8xf32, #tpu.memory_space<vmem>>, vector<1x5x8xf32>
    %4 = vector.shape_cast %3 : vector<1x5x8xf32> to vector<5x8xf32>
    %c0_2 = arith.constant 0 : index
    %c0_3 = arith.constant 0 : index
    %c0_4 = arith.constant 0 : index
    %5 = vector.load %arg2[%c0_2, %c0_3, %c0_4] : memref<2x5x5xf32, #tpu.memory_space<vmem>>, vector<1x5x5xf32>
    %6 = vector.shape_cast %5 : vector<1x5x5xf32> to vector<5x5xf32>
    %c0_5 = arith.constant 0 : index
    %c0_6 = arith.constant 0 : index
    %c0_7 = arith.constant 0 : index
    %7 = vector.load %arg3[%c0_5, %c0_6, %c0_7] : memref<2x5x5xf32, #tpu.memory_space<vmem>>, vector<1x5x5xf32>
    %8 = vector.shape_cast %7 : vector<1x5x5xf32> to vector<5x5xf32>
    %cst = arith.constant dense<0.000000e+00> : vector<5x8xf32>
    %9 = tpu.matmul %6, %4, %cst {dimension_numbers = #tpu.dot_dimension_numbers<[1], [0], [0], [1], [0, 0, 1, 1], [], []>} : vector<5x5xf32>, vector<5x8xf32>, vector<5x8xf32> -> vector<5x8xf32>
    %cst_8 = arith.constant dense<0.000000e+00> : vector<8x8xf32>
    %10 = tpu.matmul %4, %9, %cst_8 {dimension_numbers = #tpu.dot_dimension_numbers<[0], [0], [1], [1], [0, 1, 1, 1], [], []>} : vector<5x8xf32>, vector<5x8xf32>, vector<8x8xf32> -> vector<8x8xf32>
    %cst_9 = arith.constant dense<0xFF800000> : vector<8xf32>
    %11 = vector.multi_reduction <maximumf>, %10, %cst_9 [1] : vector<8x8xf32> to vector<8xf32>
    %12 = vector.shape_cast %11 : vector<8xf32> to vector<8x1xf32>
    %13 = vector.broadcast %12 : vector<8x1xf32> to vector<8x8xf32>
    %14 = arith.subf %10, %13 : vector<8x8xf32>
    %15 = math.exp %14 : vector<8x8xf32>
    %cst_10 = arith.constant dense<0.000000e+00> : vector<8xf32>
    %16 = vector.multi_reduction <add>, %15, %cst_10 [1] : vector<8x8xf32> to vector<8xf32>
    %17 = vector.shape_cast %16 : vector<8xf32> to vector<8x1xf32>
    %18 = tpu.reciprocal %17 {approx = true} : vector<8x1xf32> -> vector<8x1xf32>
    %19 = vector.broadcast %18 : vector<8x1xf32> to vector<8x8xf32>
    %20 = arith.mulf %15, %19 : vector<8x8xf32>
    %cst_11 = arith.constant 0.000000e+00 : f32
    %21 = vector.shape_cast %2 : vector<8x1xi1> to vector<8x1xi1>
    %22 = vector.broadcast %21 : vector<8x1xi1> to vector<8x8xi1>
    %23 = vector.broadcast %cst_11 : f32 to vector<8x8xf32>
    %24 = arith.select %22, %23, %20 : vector<8x8xi1>, vector<8x8xf32>
    %cst_12 = arith.constant dense<0.000000e+00> : vector<5x8xf32>
    %25 = tpu.matmul %4, %24, %cst_12 {dimension_numbers = #tpu.dot_dimension_numbers<[1], [0], [0], [1], [0, 0, 1, 1], [], []>} : vector<5x8xf32>, vector<8x8xf32>, vector<5x8xf32> -> vector<5x8xf32>
    %cst_13 = arith.constant dense<0.000000e+00> : vector<5x8xf32>
    %26 = tpu.matmul %8, %25, %cst_13 {dimension_numbers = #tpu.dot_dimension_numbers<[1], [0], [0], [1], [0, 0, 1, 1], [], []>} : vector<5x5xf32>, vector<5x8xf32>, vector<5x8xf32> -> vector<5x8xf32>
    %27 = arith.addf %4, %26 : vector<5x8xf32>
    %c1 = arith.constant 1 : index
    %c0_14 = arith.constant 0 : index
    %c0_15 = arith.constant 0 : index
    %28 = vector.load %arg2[%c1, %c0_14, %c0_15] : memref<2x5x5xf32, #tpu.memory_space<vmem>>, vector<1x5x5xf32>
    %29 = vector.shape_cast %28 : vector<1x5x5xf32> to vector<5x5xf32>
    %c1_16 = arith.constant 1 : index
    %c0_17 = arith.constant 0 : index
    %c0_18 = arith.constant 0 : index
    %30 = vector.load %arg3[%c1_16, %c0_17, %c0_18] : memref<2x5x5xf32, #tpu.memory_space<vmem>>, vector<1x5x5xf32>
    %31 = vector.shape_cast %30 : vector<1x5x5xf32> to vector<5x5xf32>
    %cst_19 = arith.constant dense<0.000000e+00> : vector<5x8xf32>
    %32 = tpu.matmul %29, %27, %cst_19 {dimension_numbers = #tpu.dot_dimension_numbers<[1], [0], [0], [1], [0, 0, 1, 1], [], []>} : vector<5x5xf32>, vector<5x8xf32>, vector<5x8xf32> -> vector<5x8xf32>
    %cst_20 = arith.constant dense<0.000000e+00> : vector<8x8xf32>
    %33 = tpu.matmul %27, %32, %cst_20 {dimension_numbers = #tpu.dot_dimension_numbers<[0], [0], [1], [1], [0, 1, 1, 1], [], []>} : vector<5x8xf32>, vector<5x8xf32>, vector<8x8xf32> -> vector<8x8xf32>
    %cst_21 = arith.constant dense<0xFF800000> : vector<8xf32>
    %34 = vector.multi_reduction <maximumf>, %33, %cst_21 [1] : vector<8x8xf32> to vector<8xf32>
    %35 = vector.shape_cast %34 : vector<8xf32> to vector<8x1xf32>
    %36 = vector.broadcast %35 : vector<8x1xf32> to vector<8x8xf32>
    %37 = arith.subf %33, %36 : vector<8x8xf32>
    %38 = math.exp %37 : vector<8x8xf32>
    %cst_22 = arith.constant dense<0.000000e+00> : vector<8xf32>
    %39 = vector.multi_reduction <add>, %38, %cst_22 [1] : vector<8x8xf32> to vector<8xf32>
    %40 = vector.shape_cast %39 : vector<8xf32> to vector<8x1xf32>
    %41 = tpu.reciprocal %40 {approx = true} : vector<8x1xf32> -> vector<8x1xf32>
    %42 = vector.broadcast %41 : vector<8x1xf32> to vector<8x8xf32>
    %43 = arith.mulf %38, %42 : vector<8x8xf32>
    %cst_23 = arith.constant 0.000000e+00 : f32
    %44 = vector.shape_cast %2 : vector<8x1xi1> to vector<8x1xi1>
    %45 = vector.broadcast %44 : vector<8x1xi1> to vector<8x8xi1>
    %46 = vector.broadcast %cst_23 : f32 to vector<8x8xf32>
    %47 = arith.select %45, %46, %43 : vector<8x8xi1>, vector<8x8xf32>
    %cst_24 = arith.constant dense<0.000000e+00> : vector<5x8xf32>
    %48 = tpu.matmul %27, %47, %cst_24 {dimension_numbers = #tpu.dot_dimension_numbers<[1], [0], [0], [1], [0, 0, 1, 1], [], []>} : vector<5x8xf32>, vector<8x8xf32>, vector<5x8xf32> -> vector<5x8xf32>
    %cst_25 = arith.constant dense<0.000000e+00> : vector<5x8xf32>
    %49 = tpu.matmul %31, %48, %cst_25 {dimension_numbers = #tpu.dot_dimension_numbers<[1], [0], [0], [1], [0, 0, 1, 1], [], []>} : vector<5x5xf32>, vector<5x8xf32>, vector<5x8xf32> -> vector<5x8xf32>
    %50 = arith.addf %27, %49 : vector<5x8xf32>
    %c0_26 = arith.constant 0 : index
    %c0_27 = arith.constant 0 : index
    %c0_28 = arith.constant 0 : index
    %51 = vector.load %arg4[%c0_26, %c0_27, %c0_28] : memref<2x5x8xf32, #tpu.memory_space<vmem>>, vector<1x5x8xf32>
    %52 = vector.shape_cast %51 : vector<1x5x8xf32> to vector<5x8xf32>
    %53 = vector.shape_cast %50 : vector<5x8xf32> to vector<1x5x8xf32>
    tpu.vector_store %arg4[%c0_26, %c0_27, %c0_28], %53 {strides = array<i32>} : memref<2x5x8xf32, #tpu.memory_space<vmem>>, vector<1x5x8xf32>,
    %c1_29 = arith.constant 1 : index
    %c0_30 = arith.constant 0 : index
    %c0_31 = arith.constant 0 : index
    %54 = vector.load %arg1[%c1_29, %c0_30, %c0_31] : memref<2x5x8xf32, #tpu.memory_space<vmem>>, vector<1x5x8xf32>
    %55 = vector.shape_cast %54 : vector<1x5x8xf32> to vector<5x8xf32>
    %c0_32 = arith.constant 0 : index
    %c0_33 = arith.constant 0 : index
    %c0_34 = arith.constant 0 : index
    %56 = vector.load %arg2[%c0_32, %c0_33, %c0_34] : memref<2x5x5xf32, #tpu.memory_space<vmem>>, vector<1x5x5xf32>
    %57 = vector.shape_cast %56 : vector<1x5x5xf32> to vector<5x5xf32>
    %c0_35 = arith.constant 0 : index
    %c0_36 = arith.constant 0 : index
    %c0_37 = arith.constant 0 : index
    %58 = vector.load %arg3[%c0_35, %c0_36, %c0_37] : memref<2x5x5xf32, #tpu.memory_space<vmem>>, vector<1x5x5xf32>
    %59 = vector.shape_cast %58 : vector<1x5x5xf32> to vector<5x5xf32>
    %cst_38 = arith.constant dense<0.000000e+00> : vector<5x8xf32>
    %60 = tpu.matmul %57, %55, %cst_38 {dimension_numbers = #tpu.dot_dimension_numbers<[1], [0], [0], [1], [0, 0, 1, 1], [], []>} : vector<5x5xf32>, vector<5x8xf32>, vector<5x8xf32> -> vector<5x8xf32>
    %cst_39 = arith.constant dense<0.000000e+00> : vector<8x8xf32>
    %61 = tpu.matmul %55, %60, %cst_39 {dimension_numbers = #tpu.dot_dimension_numbers<[0], [0], [1], [1], [0, 1, 1, 1], [], []>} : vector<5x8xf32>, vector<5x8xf32>, vector<8x8xf32> -> vector<8x8xf32>
    %cst_40 = arith.constant dense<0xFF800000> : vector<8xf32>
    %62 = vector.multi_reduction <maximumf>, %61, %cst_40 [1] : vector<8x8xf32> to vector<8xf32>
    %63 = vector.shape_cast %62 : vector<8xf32> to vector<8x1xf32>
    %64 = vector.broadcast %63 : vector<8x1xf32> to vector<8x8xf32>
    %65 = arith.subf %61, %64 : vector<8x8xf32>
    %66 = math.exp %65 : vector<8x8xf32>
    %cst_41 = arith.constant dense<0.000000e+00> : vector<8xf32>
    %67 = vector.multi_reduction <add>, %66, %cst_41 [1] : vector<8x8xf32> to vector<8xf32>
    %68 = vector.shape_cast %67 : vector<8xf32> to vector<8x1xf32>
    %69 = tpu.reciprocal %68 {approx = true} : vector<8x1xf32> -> vector<8x1xf32>
    %70 = vector.broadcast %69 : vector<8x1xf32> to vector<8x8xf32>
    %71 = arith.mulf %66, %70 : vector<8x8xf32>
    %cst_42 = arith.constant 0.000000e+00 : f32
    %72 = vector.shape_cast %2 : vector<8x1xi1> to vector<8x1xi1>
    %73 = vector.broadcast %72 : vector<8x1xi1> to vector<8x8xi1>
    %74 = vector.broadcast %cst_42 : f32 to vector<8x8xf32>
    %75 = arith.select %73, %74, %71 : vector<8x8xi1>, vector<8x8xf32>
    %cst_43 = arith.constant dense<0.000000e+00> : vector<5x8xf32>
    %76 = tpu.matmul %55, %75, %cst_43 {dimension_numbers = #tpu.dot_dimension_numbers<[1], [0], [0], [1], [0, 0, 1, 1], [], []>} : vector<5x8xf32>, vector<8x8xf32>, vector<5x8xf32> -> vector<5x8xf32>
    %cst_44 = arith.constant dense<0.000000e+00> : vector<5x8xf32>
    %77 = tpu.matmul %59, %76, %cst_44 {dimension_numbers = #tpu.dot_dimension_numbers<[1], [0], [0], [1], [0, 0, 1, 1], [], []>} : vector<5x5xf32>, vector<5x8xf32>, vector<5x8xf32> -> vector<5x8xf32>
    %78 = arith.addf %55, %77 : vector<5x8xf32>
    %c1_45 = arith.constant 1 : index
    %c0_46 = arith.constant 0 : index
    %c0_47 = arith.constant 0 : index
    %79 = vector.load %arg2[%c1_45, %c0_46, %c0_47] : memref<2x5x5xf32, #tpu.memory_space<vmem>>, vector<1x5x5xf32>
    %80 = vector.shape_cast %79 : vector<1x5x5xf32> to vector<5x5xf32>
    %c1_48 = arith.constant 1 : index
    %c0_49 = arith.constant 0 : index
    %c0_50 = arith.constant 0 : index
    %81 = vector.load %arg3[%c1_48, %c0_49, %c0_50] : memref<2x5x5xf32, #tpu.memory_space<vmem>>, vector<1x5x5xf32>
    %82 = vector.shape_cast %81 : vector<1x5x5xf32> to vector<5x5xf32>
    %cst_51 = arith.constant dense<0.000000e+00> : vector<5x8xf32>
    %83 = tpu.matmul %80, %78, %cst_51 {dimension_numbers = #tpu.dot_dimension_numbers<[1], [0], [0], [1], [0, 0, 1, 1], [], []>} : vector<5x5xf32>, vector<5x8xf32>, vector<5x8xf32> -> vector<5x8xf32>
    %cst_52 = arith.constant dense<0.000000e+00> : vector<8x8xf32>
    %84 = tpu.matmul %78, %83, %cst_52 {dimension_numbers = #tpu.dot_dimension_numbers<[0], [0], [1], [1], [0, 1, 1, 1], [], []>} : vector<5x8xf32>, vector<5x8xf32>, vector<8x8xf32> -> vector<8x8xf32>
    %cst_53 = arith.constant dense<0xFF800000> : vector<8xf32>
    %85 = vector.multi_reduction <maximumf>, %84, %cst_53 [1] : vector<8x8xf32> to vector<8xf32>
    %86 = vector.shape_cast %85 : vector<8xf32> to vector<8x1xf32>
    %87 = vector.broadcast %86 : vector<8x1xf32> to vector<8x8xf32>
    %88 = arith.subf %84, %87 : vector<8x8xf32>
    %89 = math.exp %88 : vector<8x8xf32>
    %cst_54 = arith.constant dense<0.000000e+00> : vector<8xf32>
    %90 = vector.multi_reduction <add>, %89, %cst_54 [1] : vector<8x8xf32> to vector<8xf32>
    %91 = vector.shape_cast %90 : vector<8xf32> to vector<8x1xf32>
    %92 = tpu.reciprocal %91 {approx = true} : vector<8x1xf32> -> vector<8x1xf32>
    %93 = vector.broadcast %92 : vector<8x1xf32> to vector<8x8xf32>
    %94 = arith.mulf %89, %93 : vector<8x8xf32>
    %cst_55 = arith.constant 0.000000e+00 : f32
    %95 = vector.shape_cast %2 : vector<8x1xi1> to vector<8x1xi1>
    %96 = vector.broadcast %95 : vector<8x1xi1> to vector<8x8xi1>
    %97 = vector.broadcast %cst_55 : f32 to vector<8x8xf32>
    %98 = arith.select %96, %97, %94 : vector<8x8xi1>, vector<8x8xf32>
    %cst_56 = arith.constant dense<0.000000e+00> : vector<5x8xf32>
    %99 = tpu.matmul %78, %98, %cst_56 {dimension_numbers = #tpu.dot_dimension_numbers<[1], [0], [0], [1], [0, 0, 1, 1], [], []>} : vector<5x8xf32>, vector<8x8xf32>, vector<5x8xf32> -> vector<5x8xf32>
    %cst_57 = arith.constant dense<0.000000e+00> : vector<5x8xf32>
    %100 = tpu.matmul %82, %99, %cst_57 {dimension_numbers = #tpu.dot_dimension_numbers<[1], [0], [0], [1], [0, 0, 1, 1], [], []>} : vector<5x5xf32>, vector<5x8xf32>, vector<5x8xf32> -> vector<5x8xf32>
    %101 = arith.addf %78, %100 : vector<5x8xf32>
    %c1_58 = arith.constant 1 : index
    %c0_59 = arith.constant 0 : index
    %c0_60 = arith.constant 0 : index
    %102 = vector.load %arg4[%c1_58, %c0_59, %c0_60] : memref<2x5x8xf32, #tpu.memory_space<vmem>>, vector<1x5x8xf32>
    %103 = vector.shape_cast %102 : vector<1x5x8xf32> to vector<5x8xf32>
    %104 = vector.shape_cast %101 : vector<5x8xf32> to vector<1x5x8xf32>
    tpu.vector_store %arg4[%c1_58, %c0_59, %c0_60], %104 {strides = array<i32>} : memref<2x5x8xf32, #tpu.memory_space<vmem>>, vector<1x5x8xf32>,
    return
  }
  func.func @transform_0(%arg0: i32) -> (i32, i32, i32) {
    %c0_i32 = arith.constant 0 : i32
    %c0_i32_0 = arith.constant 0 : i32
    %c0_i32_1 = arith.constant 0 : i32
    return %arg0, %c0_i32, %c0_i32_0 : i32, i32, i32
  }
  func.func @transform_1(%arg0: i32) -> (i32, i32, i32) {
    %c0_i32 = arith.constant 0 : i32
    %c0_i32_0 = arith.constant 0 : i32
    %c0_i32_1 = arith.constant 0 : i32
    %c0_i32_2 = arith.constant 0 : i32
    return %c0_i32, %c0_i32_0, %c0_i32_1 : i32, i32, i32
  }
  func.func @transform_2(%arg0: i32) -> (i32, i32, i32) {
    %c0_i32 = arith.constant 0 : i32
    %c0_i32_0 = arith.constant 0 : i32
    %c0_i32_1 = arith.constant 0 : i32
    %c0_i32_2 = arith.constant 0 : i32
    return %c0_i32, %c0_i32_0, %c0_i32_1 : i32, i32, i32
  }
  func.func @transform_3(%arg0: i32) -> (i32, i32, i32) {
    %c0_i32 = arith.constant 0 : i32
    %c0_i32_0 = arith.constant 0 : i32
    %c0_i32_1 = arith.constant 0 : i32
    return %arg0, %c0_i32, %c0_i32_0 : i32, i32, i32
  }
}

</mosaic_0001>

<bundles_post_ra>
// kernel: tpu_custom_call.1
= control target key start
LH: loop header
LB: loop body
LE: loop exit
PB: predicated region body
PF: predicated region fallthrough
CT: control target
= control target key end

     0   :  { %vm24_vm0 = vcmask 1044480   ;;  %vm20_vm1 = vcmask 39936   ;;  %v1596_v0 = vmov 0.0   ;;  %vm1597_vm2 = vmmov 0   ;;  %s1757_s0 = inlined_call_operand.vmem [shape: f32[2,5,8], index: 0, kind: input, shape index: {}]   ;;  %s1758_s1 = inlined_call_operand.vmem [shape: f32[2,5,5], index: 1, kind: input, shape index: {}]   ;;  %s1759_s2 = inlined_call_operand.vmem [shape: f32[2,5,5], index: 2, kind: input, shape index: {}]   ;;  %s1760_s3 = inlined_call_operand.vmem [shape: f32[2,5,8], index: 3, kind: output, shape index: {}]  }
   0x1   :  { %1498 = vmatprep.subr.mxu0 %v1596_v0  ;;  %v17_v1 = vld [vmem:[%s1757_s0] sm:$0x1f]  ;;  %1500 = vmatprep.mubr.msk.f32.mxu0 %vm1597_vm2, %v1596_v0  ;;  %vm206_vm3 = vcmask 64512   ;;  %v14_v15 = vlaneseq  ;;  %v1432_v25 = vld [vmem:[%s1758_s1 + $0x8] sm:$0x1f]  ;;  %vm719_vm5 = vcmask 61440  }
   0x2   :  { %v18_v2 = vld [vmem:[%s1758_s1] sm:$0x1f]  ;;  %1499 = vmatpush3.msk.msra.mxu0 %vm24_vm0, %v17_v1  ;;  %98 = vxpose.xlu0.b32.start.end [1/1] (short) (narrow) %v17_v1, 8  ;;  %v1670_v26 = vld [vmem:[%s1757_s0 + $0x8] sm:$0x1f] }
   0x3   :  { %1501 = vmatmul.mubr.msk.f32.vlgmr.msra.gmra.mrb[0].mxu0 %vm20_vm1, %v18_v2  ;;  %1503 = vmatprep.subr.mxu1 %v1596_v0  ;;  %v1642_v16 = vshrl.u32 %v14_v15, 7  ;;  %v19_v19 = vld [vmem:[%s1759_s2] sm:$0x1f]  ;;  %v1433_v42 = vld [vmem:[%s1759_s2 + $0x8] sm:$0x1f] }
   0x4   :  { %1505 = vmatprep.mubr.msk.f32.mxu1 %vm1597_vm2, %v1596_v0  ;;  %1508 = vmatprep.subr.mxu0 %v1596_v0  ;;  %v723_v41 = vld [vmem:[%s1758_s1] sm:$0x1f] }
   0x5   :  { %1510 = vmatprep.mubr.msk.f32.mxu0 %vm1597_vm2, %v1596_v0  ;;  %vm1465_vm4 = vcmp.ne.s32.totalorder %v1642_v16, 7  ;;  %v724_v62 = vld [vmem:[%s1759_s2] sm:$0x1f] }
  0x82   :  { %v114_v3 = vpop.trf.xlu0 }
  0xd6   :  { %v94_v4 = vpop.f32.mrb[0].mxu0 }
  0xd7   :  { %v1502_v5 = vpop.f32.mrb[1].mxu0  ;;  %1504 = vmatpush3.msk.msra.mxu1 %vm24_vm0, %v94_v4 }
  0xd8   :  { %1506 = vmatmul.mubr.msk.f32.vlgmr.msra.gmra.mrb[0].mxu1 %vm20_vm1, %v114_v3  ;;  %1513 = vmatprep.subr.mxu1 %v1596_v0  ;;  %v1453_v5 = vld [vmem:[%s1758_s1 + $0x8] sm:$0x1f] }
  0xd9   :  { %1515 = vmatprep.mubr.msk.f32.mxu1 %vm1597_vm2, %v1596_v0 }
 0x1ab   :  { %v202_v6 = vpop.f32.mrb[0].mxu1 }
 0x1ac   :  { %v1507_v7 = vpop.f32.mrb[1].mxu1  ;;  %v207_v8 = vsel %vm206_vm3, %v202_v6, -inf }
 0x1ad   :  { %208 = vmax.xlane.f32.xlu0 %v207_v8 }
 0x23a   :  { %v209_v9 = vpop.xlane.xlu0 %208 }
 0x23b   :  { %v210_v10 = vsub.f32 %v202_v6, %v209_v9 }
 0x23d   :  { %v211_v11 = vmul.f32 1.442695, %v210_v10 }
 0x23f   :  { %1580 = vpow2.f32 %v211_v11 }
 0x249   :  { %v1581_v12 = vpop.eup %1580 }
 0x24a   :  { %v213_v13 = vsel %vm206_vm3, %v1581_v12, 0.0 }
 0x24b   :  { %214 = vadd.xlane.f32.xlu1 %v213_v13 }
 0x2d8   :  { %v215_v14 = vpop.xlane.xlu1 %214 }
 0x2d9   :  { %1582 = vrcp.f32 %v215_v14 }
 0x2e3   :  { %v1583_v17 = vpop.eup %1582 }
 0x2e4   :  { %v217_v18 = vmul.f32 %v1583_v17, %v1581_v12 }
 0x2e6   :  { %1509 = vmatpush3.msk.msra.mxu0 %vm1465_vm4, %v217_v18 }
 0x2e7   :  { %1511 = vmatmul.mubr.msk.f32.vlgmr.msra.gmra.mrb[2].mxu0 %vm206_vm3, %v17_v1  ;;  %1518 = vmatprep.subr.mxu0 %v1596_v0 }
 0x2e8   :  { %1520 = vmatprep.mubr.msk.f32.mxu0 %vm1597_vm2, %v1596_v0 }
 0x3ba   :  { %v289_v20 = vpop.f32.mrb[2].mxu0 }
 0x3bb   :  { %v1512_v21 = vpop.f32.mrb[3].mxu0  ;;  %1514 = vmatpush3.msk.msra.mxu1 %vm24_vm0, %v289_v20 }
 0x3bc   :  { %1516 = vmatmul.mubr.msk.f32.vlgmr.msra.gmra.mrb[2].mxu1 %vm20_vm1, %v19_v19  ;;  %1523 = vmatprep.subr.mxu1 %v1596_v0 }
 0x3bd   :  { %1525 = vmatprep.mubr.msk.f32.mxu1 %vm1597_vm2, %v1596_v0 }
 0x48f   :  { %v365_v22 = vpop.f32.mrb[2].mxu1 }
 0x490   :  { %v369_v23 = vadd.f32 %v365_v22, %v17_v1  ;;  %v1517_v24 = vpop.f32.mrb[3].mxu1 }
 0x492   :  { %450 = vxpose.xlu1.b32.start.end [1/1] (short) (narrow) %v369_v23, 8  ;;  %1519 = vmatpush3.msk.msra.mxu0 %vm24_vm0, %v369_v23 }
 0x493   :  { %1521 = vmatmul.mubr.msk.f32.vlgmr.msra.gmra.mrb[4].mxu0 %vm20_vm1, %v1432_v25  ;;  %1528 = vmatprep.subr.mxu0 %v1596_v0 }
 0x494   :  { %1530 = vmatprep.mubr.msk.f32.mxu0 %vm1597_vm2, %v1596_v0 }
 0x496   :  { %801 = vxpose.xlu1.b32.start.end [1/1] (short) (narrow) %v1670_v26, 8 }
 0x512   :  { %v466_v27 = vpop.trf.xlu1 }
 0x516   :  { %v817_v45 = vpop.trf.xlu1 }
 0x566   :  { %v446_v28 = vpop.f32.mrb[4].mxu0 }
 0x567   :  { %v1522_v29 = vpop.f32.mrb[5].mxu0  ;;  %1524 = vmatpush3.msk.msra.mxu1 %vm24_vm0, %v446_v28 }
 0x568   :  { %1526 = vmatmul.mubr.msk.f32.vlgmr.msra.gmra.mrb[4].mxu1 %vm20_vm1, %v466_v27  ;;  %1533 = vmatprep.subr.mxu1 %v1596_v0 }
 0x569   :  { %1535 = vmatprep.mubr.msk.f32.mxu1 %vm1597_vm2, %v1596_v0 }
 0x63b   :  { %v554_v30 = vpop.f32.mrb[4].mxu1 }
 0x63c   :  { %v1527_v31 = vpop.f32.mrb[5].mxu1  ;;  %v558_v32 = vsel %vm206_vm3, %v554_v30, -inf }
 0x63d   :  { %559 = vmax.xlane.f32.xlu0 %v558_v32 }
 0x6ca   :  { %v560_v33 = vpop.xlane.xlu0 %559 }
 0x6cb   :  { %v561_v34 = vsub.f32 %v554_v30, %v560_v33 }
 0x6cd   :  { %v562_v35 = vmul.f32 1.442695, %v561_v34 }
 0x6cf   :  { %1584 = vpow2.f32 %v562_v35 }
 0x6d9   :  { %v1585_v36 = vpop.eup %1584 }
 0x6da   :  { %v564_v37 = vsel %vm206_vm3, %v1585_v36, 0.0 }
 0x6db   :  { %565 = vadd.xlane.f32.xlu0 %v564_v37 }
 0x768   :  { %v566_v38 = vpop.xlane.xlu0 %565 }
 0x769   :  { %1586 = vrcp.f32 %v566_v38 }
 0x773   :  { %v1587_v39 = vpop.eup %1586 }
 0x774   :  { %v568_v40 = vmul.f32 %v1587_v39, %v1585_v36 }
 0x776   :  { %1529 = vmatpush3.msk.msra.mxu0 %vm1465_vm4, %v568_v40 }
 0x777   :  { %1531 = vmatmul.mubr.msk.f32.vlgmr.msra.gmra.mrb[6].mxu0 %vm206_vm3, %v369_v23  ;;  %1538 = vmatprep.subr.mxu0 %v1596_v0 }
 0x778   :  { %1539 = vmatpush3.msk.msra.mxu0 %vm24_vm0, %v1670_v26  ;;  %1540 = vmatprep.mubr.msk.f32.mxu0 %vm1597_vm2, %v1596_v0 }
 0x779   :  { %1548 = vmatprep.subr.mxu0 %v1596_v0 }
 0x77b   :  { %1541 = vmatmul.mubr.msk.f32.vlgmr.msra.gmra.mrb[8].mxu0 %vm20_vm1, %v723_v41 }
 0x77c   :  { %1550 = vmatprep.mubr.msk.f32.mxu0 %vm1597_vm2, %v1596_v0 }
 0x84a   :  { %v638_v43 = vpop.f32.mrb[6].mxu0 }
 0x84b   :  { %v1532_v44 = vpop.f32.mrb[7].mxu0  ;;  %1534 = vmatpush3.msk.msra.mxu1 %vm24_vm0, %v638_v43 }
 0x84c   :  { %1536 = vmatmul.mubr.msk.f32.vlgmr.msra.gmra.mrb[6].mxu1 %vm20_vm1, %v1433_v42  ;;  %1543 = vmatprep.subr.mxu1 %v1596_v0 }
 0x84d   :  { %1545 = vmatprep.mubr.msk.f32.mxu1 %vm1597_vm2, %v1596_v0 }
 0x84e   :  { %v797_v46 = vpop.f32.mrb[8].mxu0 }
 0x84f   :  { %v1542_v47 = vpop.f32.mrb[9].mxu0  ;;  %1544 = vmatpush3.msk.msra.mxu1 %vm24_vm0, %v797_v46 }
 0x850   :  { %1546 = vmatmul.mubr.msk.f32.vlgmr.msra.gmra.mrb[8].mxu1 %vm20_vm1, %v817_v45  ;;  %1553 = vmatprep.subr.mxu1 %v1596_v0 }
 0x851   :  { %1555 = vmatprep.mubr.msk.f32.mxu1 %vm1597_vm2, %v1596_v0 }
 0x91f   :  { %v714_v48 = vpop.f32.mrb[6].mxu1 }
 0x920   :  { %v718_v49 = vadd.f32 %v714_v48, %v369_v23  ;;  %v1537_v50 = vpop.f32.mrb[7].mxu1 }
 0x922   :  { %720 = vst.msk [vmem:[%s1760_s3] sm:$0x1f] %vm719_vm5, %v718_v49 }
 0x923   :  { %v905_v51 = vpop.f32.mrb[8].mxu1 }
 0x924   :  { %v1547_v52 = vpop.f32.mrb[9].mxu1  ;;  %v909_v53 = vsel %vm206_vm3, %v905_v51, -inf }
 0x925   :  { %910 = vmax.xlane.f32.xlu0 %v909_v53 }
 0x9b2   :  { %v911_v54 = vpop.xlane.xlu0 %910 }
 0x9b3   :  { %v912_v55 = vsub.f32 %v905_v51, %v911_v54 }
 0x9b5   :  { %v913_v56 = vmul.f32 1.442695, %v912_v55 }
 0x9b7   :  { %1588 = vpow2.f32 %v913_v56 }
 0x9c1   :  { %v1589_v57 = vpop.eup %1588 }
 0x9c2   :  { %v915_v58 = vsel %vm206_vm3, %v1589_v57, 0.0 }
 0x9c3   :  { %916 = vadd.xlane.f32.xlu1 %v915_v58 }
 0xa50   :  { %v917_v59 = vpop.xlane.xlu1 %916 }
 0xa51   :  { %1590 = vrcp.f32 %v917_v59 }
 0xa5b   :  { %v1591_v60 = vpop.eup %1590 }
 0xa5c   :  { %v919_v61 = vmul.f32 %v1591_v60, %v1589_v57 }
 0xa5e   :  { %1549 = vmatpush3.msk.msra.mxu0 %vm1465_vm4, %v919_v61 }
 0xa5f   :  { %1551 = vmatmul.mubr.msk.f32.vlgmr.msra.gmra.mrb[10].mxu0 %vm206_vm3, %v1670_v26  ;;  %1558 = vmatprep.subr.mxu0 %v1596_v0 }
 0xa60   :  { %1560 = vmatprep.mubr.msk.f32.mxu0 %vm1597_vm2, %v1596_v0 }
 0xb32   :  { %v989_v63 = vpop.f32.mrb[10].mxu0 }
 0xb33   :  { %v1552_v1 = vpop.f32.mrb[11].mxu0  ;;  %1554 = vmatpush3.msk.msra.mxu1 %vm24_vm0, %v989_v63 }
 0xb34   :  { %1556 = vmatmul.mubr.msk.f32.vlgmr.msra.gmra.mrb[10].mxu1 %vm20_vm1, %v724_v62  ;;  %1563 = vmatprep.subr.mxu1 %v1596_v0 }
 0xb35   :  { %1565 = vmatprep.mubr.msk.f32.mxu1 %vm1597_vm2, %v1596_v0 }
 0xc07   :  { %v1065_v2 = vpop.f32.mrb[10].mxu1 }
 0xc08   :  { %v1069_v3 = vadd.f32 %v1670_v26, %v1065_v2  ;;  %v1557_v4 = vpop.f32.mrb[11].mxu1 }
 0xc0a   :  { %1148 = vxpose.xlu0.b32.start.end [1/1] (short) (narrow) %v1069_v3, 8  ;;  %1559 = vmatpush3.msk.msra.mxu0 %vm24_vm0, %v1069_v3 }
 0xc0b   :  { %1561 = vmatmul.mubr.msk.f32.vlgmr.msra.gmra.mrb[12].mxu0 %vm20_vm1, %v1453_v5  ;;  %1568 = vmatprep.subr.mxu0 %v1596_v0 }
 0xc0c   :  { %1570 = vmatprep.mubr.msk.f32.mxu0 %vm1597_vm2, %v1596_v0 }
 0xc8a   :  { %v1164_v6 = vpop.trf.xlu0 }
 0xcde   :  { %v1144_v7 = vpop.f32.mrb[12].mxu0 }
 0xcdf   :  { %v1562_v8 = vpop.f32.mrb[13].mxu0  ;;  %1564 = vmatpush3.msk.msra.mxu1 %vm24_vm0, %v1144_v7 }
 0xce0   :  { %1566 = vmatmul.mubr.msk.f32.vlgmr.msra.gmra.mrb[12].mxu1 %vm20_vm1, %v1164_v6  ;;  %1573 = vmatprep.subr.mxu1 %v1596_v0 }
 0xce1   :  { %1575 = vmatprep.mubr.msk.f32.mxu1 %vm1597_vm2, %v1596_v0  ;;  %v1454_v0 = vld [vmem:[%s1759_s2 + $0x8] sm:$0x1f] }
 0xdb3   :  { %v1252_v9 = vpop.f32.mrb[12].mxu1 }
 0xdb4   :  { %v1567_v10 = vpop.f32.mrb[13].mxu1  ;;  %v1256_v11 = vsel %vm206_vm3, %v1252_v9, -inf }
 0xdb5   :  { %1257 = vmax.xlane.f32.xlu1 %v1256_v11 }
 0xe42   :  { %v1258_v12 = vpop.xlane.xlu1 %1257 }
 0xe43   :  { %v1259_v13 = vsub.f32 %v1252_v9, %v1258_v12 }
 0xe45   :  { %v1260_v14 = vmul.f32 1.442695, %v1259_v13 }
 0xe47   :  { %1592 = vpow2.f32 %v1260_v14 }
 0xe51   :  { %v1593_v15 = vpop.eup %1592 }
 0xe52   :  { %v1262_v17 = vsel %vm206_vm3, %v1593_v15, 0.0 }
 0xe53   :  { %1263 = vadd.xlane.f32.xlu1 %v1262_v17 }
 0xee0   :  { %v1264_v18 = vpop.xlane.xlu1 %1263 }
 0xee1   :  { %1594 = vrcp.f32 %v1264_v18 }
 0xeeb   :  { %v1595_v19 = vpop.eup %1594 }
 0xeec   :  { %v1266_v20 = vmul.f32 %v1595_v19, %v1593_v15 }
 0xeee   :  { %1569 = vmatpush3.msk.msra.mxu0 %vm1465_vm4, %v1266_v20 }
 0xeef   :  { %1571 = vmatmul.mubr.msk.f32.vlgmr.msra.gmra.mrb[14].mxu0 %vm206_vm3, %v1069_v3 }
 0xfc2   :  { %v1336_v21 = vpop.f32.mrb[14].mxu0 }
 0xfc3   :  { %v1572_v22 = vpop.f32.mrb[15].mxu0  ;;  %1574 = vmatpush3.msk.msra.mxu1 %vm24_vm0, %v1336_v21 }
 0xfc4   :  { %1576 = vmatmul.mubr.msk.f32.vlgmr.msra.gmra.mrb[14].mxu1 %vm20_vm1, %v1454_v0 }
0x1097   :  { %v1412_v23 = vpop.f32.mrb[14].mxu1 }
0x1098   :  { %v1416_v24 = vadd.f32 %v1412_v23, %v1069_v3  ;;  %v1577_v25 = vpop.f32.mrb[15].mxu1 }
0x109a   :  { %1464 = vst.msk [vmem:[%s1760_s3 + $0x8] sm:$0x1f] %vm719_vm5, %v1416_v24 }

</bundles_post_ra>
